<compile_context>
chip_gen: v7x
topology: tpu7x:2x2x1
jax: 0.10.0
libtpu: 0.0.40
codegen_flags: <defaults>
</compile_context>

<pallas_src>
import functools

import jax
import jax.numpy as jnp
from jax import lax
from jax.experimental import pallas as pl
from jax.experimental.pallas import tpu as pltpu


def _round_up(v, m):
    return (v + m - 1) // m * m


def spade_kernel(colmask_ref, mask_ref, x_ref, mean_ref, istd_ref,
                 w1_ref, b1_ref, wgb_ref, bgb_ref,
                 out_ref,
                 masklin_ref, featlin_ref, gb_ref,
                 *, H, W, C, M, K, pad):
    """One grid step == one batch element; all arrays are (rows, H*W) lane-dense.

    colmask_ref : (K, HW)        f32 {0,1} per-dx column-validity (precomputed)
    mask_ref    : (M, HW)        unpadded mask, flattened spatial
    x_ref       : (C, HW)        feature map
    mean_ref    : (C, 1)         per-channel mean (single-pass, wrapper)
    istd_ref    : (C, 1)         per-channel 1/sqrt(var + eps)
    w1_ref      : (Cp, K*K*Mp)   conv1 weight, contraction order (dy, dx, ci),
                                 channel axes zero-padded to the sublane tile
    b1_ref      : (Cp, 1)
    wgb_ref     : (2C, K*K*Cp)   gamma||beta conv weights (fused)
    bgb_ref     : (2C, 1)
    out_ref     : (C, HW)
    masklin_ref : (Mp, L)        scratch - guard-padded linearised mask
    featlin_ref : (Cp, L)        scratch - guard-padded linearised features
    gb_ref      : (2C, HW) f32   scratch - fused gamma||beta result
    """
    HW = H * W
    g = pad * (W + 1)
    D0 = 128                                   # lane offset of the data region
    mm_dtype = w1_ref.dtype
    Mp = masklin_ref.shape[0]
    Cp = featlin_ref.shape[0]

    # Hoisted per-dx column masks (center column dx == pad needs no mask).
    cm_rows = [colmask_ref[dx:dx + 1, :].astype(mm_dtype) for dx in range(K)]

    def zero_guards(lin_ref, rows):
        if g > 0:
            lin_ref[:, D0 - g:D0] = jnp.zeros((rows, g), mm_dtype)
            lin_ref[:, D0 + HW:D0 + HW + g] = jnp.zeros((rows, g), mm_dtype)

    def gather_patches(lin_ref, rows):
        # vreg-resident im2col: K*K shifted slices of the guard-padded buffer,
        # each a sublane-aligned (rows, HW) slab, stacked to (K*K*rows, HW).
        taps = []
        for dy in range(K):
            for dx in range(K):
                s = D0 + (dy - pad) * W + (dx - pad)
                tap = lin_ref[:, s:s + HW]
                if dx != pad:
                    tap = tap * cm_rows[dx]
                taps.append(tap)
        return jnp.concatenate(taps, axis=0)

    # ---- stage the mask into its guard-padded, channel-padded scratch ----
    zero_guards(masklin_ref, Mp)
    masklin_ref[0:M, D0:D0 + HW] = mask_ref[...].astype(mm_dtype)
    if Mp > M:
        masklin_ref[M:Mp, D0:D0 + HW] = jnp.zeros((Mp - M, HW), mm_dtype)

    # ---- conv1: mask -> features, ReLU (single fused MXU matmul) ----
    pm = gather_patches(masklin_ref, Mp)                         # (K*K*Mp, HW)
    feat = jnp.dot(w1_ref[...], pm, preferred_element_type=jnp.float32)
    feat = jnp.maximum(feat + b1_ref[...], 0.0)                  # (Cp, HW) f32

    # ---- stage features into their guard-padded scratch (aligned store) ----
    zero_guards(featlin_ref, Cp)
    featlin_ref[:, D0:D0 + HW] = feat.astype(mm_dtype)

    # ---- conv2: gamma & beta in ONE fused matmul ----
    pf = gather_patches(featlin_ref, Cp)                         # (K*K*Cp, HW)
    gb_ref[...] = jnp.dot(wgb_ref[...], pf,
                          preferred_element_type=jnp.float32) + bgb_ref[...]
    gamma = gb_ref[0:C, :]
    beta = gb_ref[C:2 * C, :]

    # ---- normalise x and modulate ----
    x_norm = (x_ref[...] - mean_ref[...]) * istd_ref[...]        # (C, HW) f32
    out_ref[...] = gamma * x_norm + beta


def spade_forward(x_nchw, mask_nchw, params, *, kernel_size=3, epsilon=1e-5,
                  matmul_dtype=jnp.float32):
    """SPADE forward.  NCHW in, NCHW out (matching the PyTorch module).

    params = (w1, b1, wg, bg, wb, bb) with PyTorch-style OIHW conv weights and
    per-output-channel biases.  `matmul_dtype=jnp.bfloat16` uses the fast MXU
    bf16 operand path on v6e/v7x; all elementwise math stays in f32 (v5e-safe
    default is f32).
    """
    w1, b1, wg, bg, wb, bb = params
    N, C, H, W = x_nchw.shape
    M = mask_nchw.shape[1]
    K = kernel_size
    pad = (K - 1) // 2
    HW = H * W
    g = pad * (W + 1)
    # TODO(synk): for production sizes (large W / H, C=128) add a lane-dense
    # spatial-strip grid axis (>=512 output lanes per strip, Buffered(2-3)
    # input strips) sized against v7x's 64 MiB/TC VMEM, and lane-pack several
    # batch elements per step on single-TC chips (v5e/v6e).
    assert g <= 128, "guard must fit inside the 128-lane aligned left pad"

    sub = 8 if jnp.dtype(matmul_dtype).itemsize >= 4 else 16     # sublane tile
    Mp = _round_up(M, sub)
    Cp = _round_up(C, sub)
    L = 128 + HW + 128            # guarded line length of the linearised scratch

    # Free reshapes only; the mask is NOT spatially padded here (guard padding
    # is staged inside the kernel -> one fewer HBM round trip of the mask).
    x_flat = x_nchw.reshape(N, C, HW).astype(jnp.float32)
    mask_flat = mask_nchw.reshape(N, M, HW).astype(jnp.float32)

    # Single-pass batch statistics over (N, H, W)  (unbiased=False, like torch).
    cnt = float(N * HW)
    s1 = jnp.sum(x_flat, axis=(0, 2))
    s2 = jnp.sum(x_flat * x_flat, axis=(0, 2))
    mean = s1 / cnt
    var = jnp.maximum(s2 / cnt - mean * mean, 0.0)
    mean2 = mean.reshape(C, 1)
    istd2 = lax.rsqrt(var + epsilon).reshape(C, 1)

    # Precomputed per-dx column-validity masks (integer arithmetic).
    col = jnp.arange(HW, dtype=jnp.int32) % W
    colmask = jnp.stack(
        [((col >= (pad - dx)) & (col < (W + pad - dx))).astype(jnp.float32)
         for dx in range(K)], axis=0)                            # (K, HW)

    # Conv weights -> contraction order (dy, dx, ci), input-channel axis
    # zero-padded to the sublane tile; gamma/beta fused along output rows;
    # conv1 output rows padded so the feature slab is written in one store.
    def prep_w(w, cin, cin_pad):
        wt = jnp.transpose(w, (0, 2, 3, 1))                      # (cout, K, K, cin)
        wt = jnp.pad(wt, ((0, 0), (0, 0), (0, 0), (0, cin_pad - cin)))
        return wt.reshape(w.shape[0], K * K * cin_pad)

    w1r = jnp.pad(prep_w(w1, M, Mp), ((0, Cp - C), (0, 0))).astype(matmul_dtype)
    b1r = jnp.pad(b1, (0, Cp - C)).reshape(Cp, 1).astype(jnp.float32)
    wgbr = prep_w(jnp.concatenate([wg, wb], axis=0), C, Cp).astype(matmul_dtype)
    bgbr = jnp.concatenate([bg, bb]).reshape(2 * C, 1).astype(jnp.float32)

    kern = functools.partial(spade_kernel, H=H, W=W, C=C, M=M, K=K, pad=pad)

    out = pl.pallas_call(
        kern,
        out_shape=jax.ShapeDtypeStruct((N, C, HW), jnp.float32),
        grid=(N,),
        in_specs=[
            pl.BlockSpec((K, HW), lambda n: (0, 0)),               # colmask
            pl.BlockSpec((None, M, HW), lambda n: (n, 0, 0)),      # mask
            pl.BlockSpec((None, C, HW), lambda n: (n, 0, 0)),      # x
            pl.BlockSpec((C, 1), lambda n: (0, 0)),                # mean
            pl.BlockSpec((C, 1), lambda n: (0, 0)),                # inv_std
            pl.BlockSpec((Cp, K * K * Mp), lambda n: (0, 0)),      # w1
            pl.BlockSpec((Cp, 1), lambda n: (0, 0)),               # b1
            pl.BlockSpec((2 * C, K * K * Cp), lambda n: (0, 0)),   # wg||wb
            pl.BlockSpec((2 * C, 1), lambda n: (0, 0)),            # bg||bb
        ],
        out_specs=pl.BlockSpec((None, C, HW), lambda n: (n, 0, 0)),
        scratch_shapes=[
            pltpu.VMEM((Mp, L), matmul_dtype),   # guard-padded linearised mask
            pltpu.VMEM((Cp, L), matmul_dtype),   # guard-padded linearised feats
            pltpu.VMEM((2 * C, HW), jnp.float32),  # fused gamma||beta result
        ],
        compiler_params=pltpu.CompilerParams(
            dimension_semantics=("parallel",)),
    )(colmask, mask_flat, x_flat, mean2, istd2, w1r, b1r, wgbr, bgbr)

    return out.reshape(N, C, H, W)


def spade_reference(x, mask, params, *, kernel_size=3, epsilon=1e-5):
    """Pure-JAX reference (mirrors the PyTorch forward) for validation."""
    w1, b1, wg, bg, wb, bb = params
    pad = (kernel_size - 1) // 2
    dn = ('NCHW', 'OIHW', 'NCHW')
    mp = jnp.pad(mask, ((0, 0), (0, 0), (pad, pad), (pad, pad)))
    feat = lax.conv_general_dilated(mp, w1, (1, 1), 'VALID',
                                    dimension_numbers=dn) + b1[None, :, None, None]
    feat = jnp.maximum(feat, 0.0)
    fp = jnp.pad(feat, ((0, 0), (0, 0), (pad, pad), (pad, pad)))
    gamma = lax.conv_general_dilated(fp, wg, (1, 1), 'VALID',
                                     dimension_numbers=dn) + bg[None, :, None, None]
    beta = lax.conv_general_dilated(fp, wb, (1, 1), 'VALID',
                                    dimension_numbers=dn) + bb[None, :, None, None]
    mean = jnp.mean(x, axis=(0, 2, 3), keepdims=True)
    var = jnp.mean((x - mean) ** 2, axis=(0, 2, 3), keepdims=True)
    xn = (x - mean) / jnp.sqrt(var + epsilon)
    return gamma * xn + beta


if __name__ == "__main__":
    # Small deterministic problem: N=2, C=4 (in_channels), M=3 (mask_channels),
    # H=W=16, kernel_size=3.
    N, C, M, H, W, K = 2, 4, 3, 16, 16, 3

    key = jax.random.PRNGKey(0)
    kx, km, k1, k2, k3, k4, k5, k6 = jax.random.split(key, 8)

    x = jax.random.normal(kx, (N, C, H, W), jnp.float32)      # NCHW like PyTorch
    mask = jax.random.normal(km, (N, M, H, W), jnp.float32)   # NCHW like PyTorch

    # PyTorch-style OIHW conv weights; per-output-channel biases.
    w1 = 0.2 * jax.random.normal(k1, (C, M, K, K), jnp.float32)
    b1 = 0.1 * jax.random.normal(k2, (C,), jnp.float32)
    wg = 0.2 * jax.random.normal(k3, (C, C, K, K), jnp.float32)
    bg = 0.1 * jax.random.normal(k4, (C,), jnp.float32)
    wb = 0.2 * jax.random.normal(k5, (C, C, K, K), jnp.float32)
    bb = 0.1 * jax.random.normal(k6, (C,), jnp.float32)
    params = (w1, b1, wg, bg, wb, bb)

    ref = jax.block_until_ready(
        spade_reference(x, mask, params, kernel_size=K, epsilon=1e-5))

    # f32 MXU path: must match the f32 reference tightly.
    out = jax.block_until_ready(
        spade_forward(x, mask, params, kernel_size=K, epsilon=1e-5))
    assert out.shape == (N, C, H, W)
    err_f32 = float(jnp.max(jnp.abs(out - ref)))
    assert err_f32 < 1e-3, f"f32 max abs err {err_f32}"

    # bf16 MXU-operand path (recommended on v6e/v7x).  Only the matmul/conv
    # operands are bf16 (accumulation + elementwise stay f32), so the only
    # difference vs. the f32 reference is bf16 operand rounding.
    out_bf16 = jax.block_until_ready(
        spade_forward(x, mask, params, kernel_size=K, epsilon=1e-5,
                      matmul_dtype=jnp.bfloat16))
    err_bf16 = float(jnp.max(jnp.abs(out_bf16 - ref)))
    assert err_bf16 < 0.25, f"bf16 max abs err {err_bf16}"

    print("KERNEL_OK")
</pallas_src>

<mosaic_0001>
module attributes {stable_mosaic.version = 11 : i64} {
  func.func @spade_kernel(%arg0: i32, %arg1: memref<3x256xf32, #tpu.memory_space<vmem>>, %arg2: memref<1x3x256xf32, #tpu.memory_space<vmem>>, %arg3: memref<1x4x256xf32, #tpu.memory_space<vmem>>, %arg4: memref<4x1xf32, #tpu.memory_space<vmem>>, %arg5: memref<4x1xf32, #tpu.memory_space<vmem>>, %arg6: memref<8x72xf32, #tpu.memory_space<vmem>>, %arg7: memref<8x1xf32, #tpu.memory_space<vmem>>, %arg8: memref<8x72xf32, #tpu.memory_space<vmem>>, %arg9: memref<8x1xf32, #tpu.memory_space<vmem>>, %arg10: memref<1x4x256xf32, #tpu.memory_space<vmem>>, %arg11: memref<8x512xf32, #tpu.memory_space<vmem>>, %arg12: memref<8x512xf32, #tpu.memory_space<vmem>>, %arg13: memref<8x256xf32, #tpu.memory_space<vmem>>) attributes {dimension_semantics = [#tpu.dimension_semantics<parallel>], iteration_bounds = array<i64: 2>, scalar_prefetch = 0 : i64, scratch_operands = 3 : i64, tpu.core_type = #tpu.core_type<tc>, window_params = [{pipeline_mode = #tpu.pipeline_mode<synchronous>, transform_indices = @transform_0, window_bounds = array<i64: 3, 256>}, {transform_indices = @transform_1, window_bounds = array<i64: 1, 3, 256>}, {transform_indices = @transform_2, window_bounds = array<i64: 1, 4, 256>}, {pipeline_mode = #tpu.pipeline_mode<synchronous>, transform_indices = @transform_3, window_bounds = array<i64: 4, 1>}, {pipeline_mode = #tpu.pipeline_mode<synchronous>, transform_indices = @transform_4, window_bounds = array<i64: 4, 1>}, {pipeline_mode = #tpu.pipeline_mode<synchronous>, transform_indices = @transform_5, window_bounds = array<i64: 8, 72>}, {pipeline_mode = #tpu.pipeline_mode<synchronous>, transform_indices = @transform_6, window_bounds = array<i64: 8, 1>}, {pipeline_mode = #tpu.pipeline_mode<synchronous>, transform_indices = @transform_7, window_bounds = array<i64: 8, 72>}, {pipeline_mode = #tpu.pipeline_mode<synchronous>, transform_indices = @transform_8, window_bounds = array<i64: 8, 1>}, {transform_indices = @transform_9, window_bounds = array<i64: 1, 4, 256>}]} {
    %c0 = arith.constant 0 : index
    %c0_0 = arith.constant 0 : index
    %0 = vector.load %arg1[%c0, %c0_0] : memref<3x256xf32, #tpu.memory_space<vmem>>, vector<1x256xf32>
    %c2 = arith.constant 2 : index
    %c0_1 = arith.constant 0 : index
    %1 = vector.load %arg1[%c2, %c0_1] : memref<3x256xf32, #tpu.memory_space<vmem>>, vector<1x256xf32>
    %cst = arith.constant 0.000000e+00 : f32
    %2 = vector.broadcast %cst : f32 to vector<8x17xf32>
    %c0_2 = arith.constant 0 : index
    %c111 = arith.constant 111 : index
    %3 = vector.load %arg11[%c0_2, %c111] : memref<8x512xf32, #tpu.memory_space<vmem>>, vector<8x17xf32>
    tpu.vector_store %arg11[%c0_2, %c111], %2 {strides = array<i32>} : memref<8x512xf32, #tpu.memory_space<vmem>>, vector<8x17xf32>,
    %cst_3 = arith.constant 0.000000e+00 : f32
    %4 = vector.broadcast %cst_3 : f32 to vector<8x17xf32>
    %c0_4 = arith.constant 0 : index
    %c384 = arith.constant 384 : index
    %5 = vector.load %arg11[%c0_4, %c384] : memref<8x512xf32, #tpu.memory_space<vmem>>, vector<8x17xf32>
    tpu.vector_store %arg11[%c0_4, %c384], %4 {strides = array<i32>} : memref<8x512xf32, #tpu.memory_space<vmem>>, vector<8x17xf32>,
    %c0_5 = arith.constant 0 : index
    %c0_6 = arith.constant 0 : index
    %c0_7 = arith.constant 0 : index
    %6 = vector.load %arg2[%c0_5, %c0_6, %c0_7] : memref<1x3x256xf32, #tpu.memory_space<vmem>>, vector<1x3x256xf32>
    %7 = vector.shape_cast %6 : vector<1x3x256xf32> to vector<3x256xf32>
    %c0_8 = arith.constant 0 : index
    %c128 = arith.constant 128 : index
    %8 = vector.load %arg11[%c0_8, %c128] : memref<8x512xf32, #tpu.memory_space<vmem>>, vector<3x256xf32>
    tpu.vector_store %arg11[%c0_8, %c128], %7 {strides = array<i32>} : memref<8x512xf32, #tpu.memory_space<vmem>>, vector<3x256xf32>,
    %cst_9 = arith.constant 0.000000e+00 : f32
    %9 = vector.broadcast %cst_9 : f32 to vector<5x256xf32>
    %c3 = arith.constant 3 : index
    %c128_10 = arith.constant 128 : index
    %10 = vector.load %arg11[%c3, %c128_10] : memref<8x512xf32, #tpu.memory_space<vmem>>, vector<5x256xf32>
    tpu.vector_store %arg11[%c3, %c128_10], %9 {strides = array<i32>} : memref<8x512xf32, #tpu.memory_space<vmem>>, vector<5x256xf32>,
    %c0_11 = arith.constant 0 : index
    %c111_12 = arith.constant 111 : index
    %11 = vector.load %arg11[%c0_11, %c111_12] : memref<8x512xf32, #tpu.memory_space<vmem>>, vector<8x256xf32>
    %12 = vector.broadcast %0 : vector<1x256xf32> to vector<8x256xf32>
    %13 = arith.mulf %11, %12 : vector<8x256xf32>
    %c0_13 = arith.constant 0 : index
    %c112 = arith.constant 112 : index
    %14 = vector.load %arg11[%c0_13, %c112] : memref<8x512xf32, #tpu.memory_space<vmem>>, vector<8x256xf32>
    %c0_14 = arith.constant 0 : index
    %c113 = arith.constant 113 : index
    %15 = vector.load %arg11[%c0_14, %c113] : memref<8x512xf32, #tpu.memory_space<vmem>>, vector<8x256xf32>
    %16 = vector.broadcast %1 : vector<1x256xf32> to vector<8x256xf32>
    %17 = arith.mulf %15, %16 : vector<8x256xf32>
    %c0_15 = arith.constant 0 : index
    %c127 = arith.constant 127 : index
    %18 = vector.load %arg11[%c0_15, %c127] : memref<8x512xf32, #tpu.memory_space<vmem>>, vector<8x256xf32>
    %19 = vector.broadcast %0 : vector<1x256xf32> to vector<8x256xf32>
    %20 = arith.mulf %18, %19 : vector<8x256xf32>
    %c0_16 = arith.constant 0 : index
    %c128_17 = arith.constant 128 : index
    %21 = vector.load %arg11[%c0_16, %c128_17] : memref<8x512xf32, #tpu.memory_space<vmem>>, vector<8x256xf32>
    %c0_18 = arith.constant 0 : index
    %c129 = arith.constant 129 : index
    %22 = vector.load %arg11[%c0_18, %c129] : memref<8x512xf32, #tpu.memory_space<vmem>>, vector<8x256xf32>
    %23 = vector.broadcast %1 : vector<1x256xf32> to vector<8x256xf32>
    %24 = arith.mulf %22, %23 : vector<8x256xf32>
    %c0_19 = arith.constant 0 : index
    %c143 = arith.constant 143 : index
    %25 = vector.load %arg11[%c0_19, %c143] : memref<8x512xf32, #tpu.memory_space<vmem>>, vector<8x256xf32>
    %26 = vector.broadcast %0 : vector<1x256xf32> to vector<8x256xf32>
    %27 = arith.mulf %25, %26 : vector<8x256xf32>
    %c0_20 = arith.constant 0 : index
    %c144 = arith.constant 144 : index
    %28 = vector.load %arg11[%c0_20, %c144] : memref<8x512xf32, #tpu.memory_space<vmem>>, vector<8x256xf32>
    %c0_21 = arith.constant 0 : index
    %c145 = arith.constant 145 : index
    %29 = vector.load %arg11[%c0_21, %c145] : memref<8x512xf32, #tpu.memory_space<vmem>>, vector<8x256xf32>
    %30 = vector.broadcast %1 : vector<1x256xf32> to vector<8x256xf32>
    %31 = arith.mulf %29, %30 : vector<8x256xf32>
    %32 = tpu.concatenate %13, %14, %17, %20, %21, %24, %27, %28, %31 in 0 : vector<8x256xf32>, vector<8x256xf32>, vector<8x256xf32>, vector<8x256xf32>, vector<8x256xf32>, vector<8x256xf32>, vector<8x256xf32>, vector<8x256xf32>, vector<8x256xf32> -> vector<72x256xf32>
    %c0_22 = arith.constant 0 : index
    %c0_23 = arith.constant 0 : index
    %33 = vector.load %arg6[%c0_22, %c0_23] : memref<8x72xf32, #tpu.memory_space<vmem>>, vector<8x72xf32>
    %cst_24 = arith.constant dense<0.000000e+00> : vector<8x256xf32>
    %34 = tpu.matmul %33, %32, %cst_24 {dimension_numbers = #tpu.dot_dimension_numbers<[1], [0], [0], [1], [0, 0, 1, 1], [], []>} : vector<8x72xf32>, vector<72x256xf32>, vector<8x256xf32> -> vector<8x256xf32>
    %c0_25 = arith.constant 0 : index
    %c0_26 = arith.constant 0 : index
    %35 = vector.load %arg7[%c0_25, %c0_26] : memref<8x1xf32, #tpu.memory_space<vmem>>, vector<8x1xf32>
    %36 = vector.broadcast %35 : vector<8x1xf32> to vector<8x256xf32>
    %37 = arith.addf %34, %36 : vector<8x256xf32>
    %cst_27 = arith.constant 0.000000e+00 : f32
    %38 = vector.broadcast %cst_27 : f32 to vector<8x256xf32>
    %39 = arith.maximumf %37, %38 : vector<8x256xf32>
    %cst_28 = arith.constant 0.000000e+00 : f32
    %40 = vector.broadcast %cst_28 : f32 to vector<8x17xf32>
    %c0_29 = arith.constant 0 : index
    %c111_30 = arith.constant 111 : index
    %41 = vector.load %arg12[%c0_29, %c111_30] : memref<8x512xf32, #tpu.memory_space<vmem>>, vector<8x17xf32>
    tpu.vector_store %arg12[%c0_29, %c111_30], %40 {strides = array<i32>} : memref<8x512xf32, #tpu.memory_space<vmem>>, vector<8x17xf32>,
    %cst_31 = arith.constant 0.000000e+00 : f32
    %42 = vector.broadcast %cst_31 : f32 to vector<8x17xf32>
    %c0_32 = arith.constant 0 : index
    %c384_33 = arith.constant 384 : index
    %43 = vector.load %arg12[%c0_32, %c384_33] : memref<8x512xf32, #tpu.memory_space<vmem>>, vector<8x17xf32>
    tpu.vector_store %arg12[%c0_32, %c384_33], %42 {strides = array<i32>} : memref<8x512xf32, #tpu.memory_space<vmem>>, vector<8x17xf32>,
    %c0_34 = arith.constant 0 : index
    %c128_35 = arith.constant 128 : index
    %44 = vector.load %arg12[%c0_34, %c128_35] : memref<8x512xf32, #tpu.memory_space<vmem>>, vector<8x256xf32>
    tpu.vector_store %arg12[%c0_34, %c128_35], %39 {strides = array<i32>} : memref<8x512xf32, #tpu.memory_space<vmem>>, vector<8x256xf32>,
    %c0_36 = arith.constant 0 : index
    %c111_37 = arith.constant 111 : index
    %45 = vector.load %arg12[%c0_36, %c111_37] : memref<8x512xf32, #tpu.memory_space<vmem>>, vector<8x256xf32>
    %46 = vector.broadcast %0 : vector<1x256xf32> to vector<8x256xf32>
    %47 = arith.mulf %45, %46 : vector<8x256xf32>
    %c0_38 = arith.constant 0 : index
    %c112_39 = arith.constant 112 : index
    %48 = vector.load %arg12[%c0_38, %c112_39] : memref<8x512xf32, #tpu.memory_space<vmem>>, vector<8x256xf32>
    %c0_40 = arith.constant 0 : index
    %c113_41 = arith.constant 113 : index
    %49 = vector.load %arg12[%c0_40, %c113_41] : memref<8x512xf32, #tpu.memory_space<vmem>>, vector<8x256xf32>
    %50 = vector.broadcast %1 : vector<1x256xf32> to vector<8x256xf32>
    %51 = arith.mulf %49, %50 : vector<8x256xf32>
    %c0_42 = arith.constant 0 : index
    %c127_43 = arith.constant 127 : index
    %52 = vector.load %arg12[%c0_42, %c127_43] : memref<8x512xf32, #tpu.memory_space<vmem>>, vector<8x256xf32>
    %53 = vector.broadcast %0 : vector<1x256xf32> to vector<8x256xf32>
    %54 = arith.mulf %52, %53 : vector<8x256xf32>
    %c0_44 = arith.constant 0 : index
    %c128_45 = arith.constant 128 : index
    %55 = vector.load %arg12[%c0_44, %c128_45] : memref<8x512xf32, #tpu.memory_space<vmem>>, vector<8x256xf32>
    %c0_46 = arith.constant 0 : index
    %c129_47 = arith.constant 129 : index
    %56 = vector.load %arg12[%c0_46, %c129_47] : memref<8x512xf32, #tpu.memory_space<vmem>>, vector<8x256xf32>
    %57 = vector.broadcast %1 : vector<1x256xf32> to vector<8x256xf32>
    %58 = arith.mulf %56, %57 : vector<8x256xf32>
    %c0_48 = arith.constant 0 : index
    %c143_49 = arith.constant 143 : index
    %59 = vector.load %arg12[%c0_48, %c143_49] : memref<8x512xf32, #tpu.memory_space<vmem>>, vector<8x256xf32>
    %60 = vector.broadcast %0 : vector<1x256xf32> to vector<8x256xf32>
    %61 = arith.mulf %59, %60 : vector<8x256xf32>
    %c0_50 = arith.constant 0 : index
    %c144_51 = arith.constant 144 : index
    %62 = vector.load %arg12[%c0_50, %c144_51] : memref<8x512xf32, #tpu.memory_space<vmem>>, vector<8x256xf32>
    %c0_52 = arith.constant 0 : index
    %c145_53 = arith.constant 145 : index
    %63 = vector.load %arg12[%c0_52, %c145_53] : memref<8x512xf32, #tpu.memory_space<vmem>>, vector<8x256xf32>
    %64 = vector.broadcast %1 : vector<1x256xf32> to vector<8x256xf32>
    %65 = arith.mulf %63, %64 : vector<8x256xf32>
    %66 = tpu.concatenate %47, %48, %51, %54, %55, %58, %61, %62, %65 in 0 : vector<8x256xf32>, vector<8x256xf32>, vector<8x256xf32>, vector<8x256xf32>, vector<8x256xf32>, vector<8x256xf32>, vector<8x256xf32>, vector<8x256xf32>, vector<8x256xf32> -> vector<72x256xf32>
    %c0_54 = arith.constant 0 : index
    %c0_55 = arith.constant 0 : index
    %67 = vector.load %arg8[%c0_54, %c0_55] : memref<8x72xf32, #tpu.memory_space<vmem>>, vector<8x72xf32>
    %cst_56 = arith.constant dense<0.000000e+00> : vector<8x256xf32>
    %68 = tpu.matmul %67, %66, %cst_56 {dimension_numbers = #tpu.dot_dimension_numbers<[1], [0], [0], [1], [0, 0, 1, 1], [], []>} : vector<8x72xf32>, vector<72x256xf32>, vector<8x256xf32> -> vector<8x256xf32>
    %c0_57 = arith.constant 0 : index
    %c0_58 = arith.constant 0 : index
    %69 = vector.load %arg9[%c0_57, %c0_58] : memref<8x1xf32, #tpu.memory_space<vmem>>, vector<8x1xf32>
    %70 = vector.broadcast %69 : vector<8x1xf32> to vector<8x256xf32>
    %71 = arith.addf %68, %70 : vector<8x256xf32>
    %c0_59 = arith.constant 0 : index
    %c0_60 = arith.constant 0 : index
    %72 = vector.load %arg13[%c0_59, %c0_60] : memref<8x256xf32, #tpu.memory_space<vmem>>, vector<8x256xf32>
    tpu.vector_store %arg13[%c0_59, %c0_60], %71 {strides = array<i32>} : memref<8x256xf32, #tpu.memory_space<vmem>>, vector<8x256xf32>,
    %c0_61 = arith.constant 0 : index
    %c0_62 = arith.constant 0 : index
    %73 = vector.load %arg13[%c0_61, %c0_62] : memref<8x256xf32, #tpu.memory_space<vmem>>, vector<4x256xf32>
    %c4 = arith.constant 4 : index
    %c0_63 = arith.constant 0 : index
    %74 = vector.load %arg13[%c4, %c0_63] : memref<8x256xf32, #tpu.memory_space<vmem>>, vector<4x256xf32>
    %c0_64 = arith.constant 0 : index
    %c0_65 = arith.constant 0 : index
    %c0_66 = arith.constant 0 : index
    %75 = vector.load %arg3[%c0_64, %c0_65, %c0_66] : memref<1x4x256xf32, #tpu.memory_space<vmem>>, vector<1x4x256xf32>
    %76 = vector.shape_cast %75 : vector<1x4x256xf32> to vector<4x256xf32>
    %c0_67 = arith.constant 0 : index
    %c0_68 = arith.constant 0 : index
    %77 = vector.load %arg4[%c0_67, %c0_68] : memref<4x1xf32, #tpu.memory_space<vmem>>, vector<4x1xf32>
    %78 = vector.broadcast %77 : vector<4x1xf32> to vector<4x256xf32>
    %79 = arith.subf %76, %78 : vector<4x256xf32>
    %c0_69 = arith.constant 0 : index
    %c0_70 = arith.constant 0 : index
    %80 = vector.load %arg5[%c0_69, %c0_70] : memref<4x1xf32, #tpu.memory_space<vmem>>, vector<4x1xf32>
    %81 = vector.broadcast %80 : vector<4x1xf32> to vector<4x256xf32>
    %82 = arith.mulf %79, %81 : vector<4x256xf32>
    %83 = arith.mulf %73, %82 : vector<4x256xf32>
    %84 = arith.addf %83, %74 : vector<4x256xf32>
    %c0_71 = arith.constant 0 : index
    %c0_72 = arith.constant 0 : index
    %c0_73 = arith.constant 0 : index
    %85 = vector.load %arg10[%c0_71, %c0_72, %c0_73] : memref<1x4x256xf32, #tpu.memory_space<vmem>>, vector<1x4x256xf32>
    %86 = vector.shape_cast %85 : vector<1x4x256xf32> to vector<4x256xf32>
    %87 = vector.shape_cast %84 : vector<4x256xf32> to vector<1x4x256xf32>
    tpu.vector_store %arg10[%c0_71, %c0_72, %c0_73], %87 {strides = array<i32>} : memref<1x4x256xf32, #tpu.memory_space<vmem>>, vector<1x4x256xf32>,
    return
  }
  func.func @transform_0(%arg0: i32) -> (i32, i32) {
    %c0_i32 = arith.constant 0 : i32
    %c0_i32_0 = arith.constant 0 : i32
    %c0_i32_1 = arith.constant 0 : i32
    return %c0_i32, %c0_i32_0 : i32, i32
  }
  func.func @transform_1(%arg0: i32) -> (i32, i32, i32) {
    %c0_i32 = arith.constant 0 : i32
    %c0_i32_0 = arith.constant 0 : i32
    %c0_i32_1 = arith.constant 0 : i32
    return %arg0, %c0_i32, %c0_i32_0 : i32, i32, i32
  }
  func.func @transform_2(%arg0: i32) -> (i32, i32, i32) {
    %c0_i32 = arith.constant 0 : i32
    %c0_i32_0 = arith.constant 0 : i32
    %c0_i32_1 = arith.constant 0 : i32
    return %arg0, %c0_i32, %c0_i32_0 : i32, i32, i32
  }
  func.func @transform_3(%arg0: i32) -> (i32, i32) {
    %c0_i32 = arith.constant 0 : i32
    %c0_i32_0 = arith.constant 0 : i32
    %c0_i32_1 = arith.constant 0 : i32
    return %c0_i32, %c0_i32_0 : i32, i32
  }
  func.func @transform_4(%arg0: i32) -> (i32, i32) {
    %c0_i32 = arith.constant 0 : i32
    %c0_i32_0 = arith.constant 0 : i32
    %c0_i32_1 = arith.constant 0 : i32
    return %c0_i32, %c0_i32_0 : i32, i32
  }
  func.func @transform_5(%arg0: i32) -> (i32, i32) {
    %c0_i32 = arith.constant 0 : i32
    %c0_i32_0 = arith.constant 0 : i32
    %c0_i32_1 = arith.constant 0 : i32
    return %c0_i32, %c0_i32_0 : i32, i32
  }
  func.func @transform_6(%arg0: i32) -> (i32, i32) {
    %c0_i32 = arith.constant 0 : i32
    %c0_i32_0 = arith.constant 0 : i32
    %c0_i32_1 = arith.constant 0 : i32
    return %c0_i32, %c0_i32_0 : i32, i32
  }
  func.func @transform_7(%arg0: i32) -> (i32, i32) {
    %c0_i32 = arith.constant 0 : i32
    %c0_i32_0 = arith.constant 0 : i32
    %c0_i32_1 = arith.constant 0 : i32
    return %c0_i32, %c0_i32_0 : i32, i32
  }
  func.func @transform_8(%arg0: i32) -> (i32, i32) {
    %c0_i32 = arith.constant 0 : i32
    %c0_i32_0 = arith.constant 0 : i32
    %c0_i32_1 = arith.constant 0 : i32
    return %c0_i32, %c0_i32_0 : i32, i32
  }
  func.func @transform_9(%arg0: i32) -> (i32, i32, i32) {
    %c0_i32 = arith.constant 0 : i32
    %c0_i32_0 = arith.constant 0 : i32
    %c0_i32_1 = arith.constant 0 : i32
    return %arg0, %c0_i32, %c0_i32_0 : i32, i32, i32
  }
}

</mosaic_0001>

<bundles_post_ra>
// kernel: tpu_custom_call.1
= control target key start
LH: loop header
LB: loop body
LE: loop exit
PB: predicated region body
PF: predicated region fallthrough
CT: control target
= control target key end

     0   :  { %14 = vsyncpa [#allocation6], 0  ;;  %s1978_s0 = inlined_call_operand.vmem [shape: f32[3,256], index: 0, kind: input, shape index: {}]   ;;  %s1979_s1 = inlined_call_operand.vmem [shape: f32[2,3,256], index: 1, kind: input, shape index: {}]   ;;  %s1980_s2 = inlined_call_operand.vmem [shape: f32[2,4,256], index: 2, kind: input, shape index: {}]   ;;  %s1981_s3 = inlined_call_operand.vmem [shape: f32[4,1], index: 3, kind: input, shape index: {}]   ;;  %s1982_s4 = inlined_call_operand.vmem [shape: f32[4,1], index: 4, kind: input, shape index: {}]   ;;  %s1983_s5 = inlined_call_operand.vmem [shape: f32[8,72], index: 5, kind: input, shape index: {}]   ;;  %s1984_s6 = inlined_call_operand.vmem [shape: f32[8,1], index: 6, kind: input, shape index: {}]   ;;  %s1985_s7 = inlined_call_operand.vmem [shape: f32[8,72], index: 7, kind: input, shape index: {}]   ;;  %s1986_s8 = inlined_call_operand.vmem [shape: f32[8,1], index: 8, kind: input, shape index: {}]   ;;  %s1987_s9 = inlined_call_operand.hbm [shape: f32[2,4,256], index: 9, kind: output, shape index: {}]  }
   0x1   :  { %16 = vsyncpa [#allocation6 + $0x1], 0  ;;  %s1578_s30 = smov 0   ;;  %s1580_s10 = smov 0  }
   0x2   :  { %s1582_s11 = smov 0   ;;  %s1584_s12 = smov 0  }
   0x3 LB: > { %s1599_s13 = sadd.s32 4294967295, %s1510_s12   ;;  %s1149_s14 = sadd.s32 4294967294, %s1510_s12   ;;  %s1510_s12 = sphi %s1584_s12, %s1995_s12   ;;  %s1506_s11 = sphi %s1582_s11, %s1994_s11   ;;  %s1502_s10 = sphi %s1580_s10, %s1993_s10   ;;  %s1498_s30 = sphi %s1578_s30, %s1992_s30  }
   0x4   : > { %s1603_s15 = sadd.s32 1, %s1510_s12   ;;  %s228_s16 = sadd.s32 1, %s1506_s11 }
   0x5   : > { %s225_s17 = ssub.s32 %s1510_s12, %s1603_s15  ;;  %p238_p0 = scmp.ne.s32.totalorder %s1506_s11, %s1502_s10 }
   0x6   : > { %p226_p1 = scmp.eq.s32.totalorder %s225_s17, 0  ;;  %p239_p2 = scmp.eq.s32.totalorder %s1599_s13, 1 }
   0x7   : > { %p244_p3 = scmp.ne.s32.totalorder %s1502_s10, %s1498_s30  ;;  %p245_p4 = scmp.eq.s32.totalorder %s1149_s14, 1 }
   0x8   : > { %s1614_s18 = scalar_select %p226_p1, %s1506_s11, %s228_s16  }
   0x9   : > { %p1616_p5 = por %p239_p2, %p238_p0  ;;  %p1620_p6 = por %p245_p4, %p244_p3 }
   0xa   : > { %p1152_p7 = scmp.ge.s32.totalorder %s1510_s12, 1  ;;  %p300_p8 = scmp.lt.s32.totalorder %s1510_s12, 3 }
   0xc   : > { %p301_p9 = pnand %p1152_p7, %p300_p8 }
   0xd   : > { %v370_v0 = vlaneseq (!%p301_p9)  ;;  %v1512_v1 = vmov (!%p301_p9), 0.0   ;;  %vm354_vm0 = vcmask (!%p301_p9), 1048440   ;;  %v1158_v2 = vld [vmem:[%s1978_s0 + $0x2] ss:$4 sm:$0x3] (!%p301_p9)  ;;  %vm356_vm1 = vcmask (!%p301_p9), 138240  }
   0xe   : > { %304 = sbr.rel (%p301_p9) target bundleno = 1142 (0x476), region = 56  ;;  %364 = vst [vmem:[#allocation2 + $0x8] sm:$0xf8] (!%p301_p9), %v1512_v1  ;;  %365 = vst [vmem:[#allocation2 + $0x10] sm:$0xf8] (!%p301_p9), %v1512_v1  ;;  %717 = vmatprep.mubr.f32.mxu0 (!%p301_p9), %v1512_v1  ;;  %1003 = vmatprep.mubr.f32.mxu1 (!%p301_p9), %v1512_v1  ;;  %p341_p10 = scmp.lt.s32.totalorder (!%p301_p9), %s1599_s13, 1 }
   0xf   : > { %v1629_v3 = vshrl.u32 (!%p301_p9), %v370_v0, 7  ;;  %355 = vst.msk [vmem:[#allocation2] sm:$0xff] (!%p301_p9), %vm354_vm0, %v1512_v1  ;;  %726 = vst.msk [vmem:[#allocation3] sm:$0xff] (!%p301_p9), %vm354_vm0, %v1512_v1  ;;  %v351_v4 = vld [vmem:[%s1978_s0] ss:$4 sm:$0x3] (!%p301_p9) }
  0x10   : > { %357 = vst.msk [vmem:[#allocation2 + $0x18] sm:$0xff] (!%p301_p9), %vm356_vm1, %v1512_v1  ;;  %727 = vst.msk [vmem:[#allocation3 + $0x18] sm:$0xff] (!%p301_p9), %vm356_vm1, %v1512_v1  ;;  %s1513_s27 = smov (!%p301_p9), 113   ;;  %s1514_s28 = smov (!%p301_p9), 127   ;;  %vm415_vm2 = vcmask (!%p301_p9), 1039360   ;;  %vm403_vm3 = vcmask (!%p301_p9), 924672  }
  0x11   : > { %v372_v5 = vsub.s32 (!%p301_p9), 0, %v1629_v3  ;;  %v376_v6 = vsub.s32 (!%p301_p9), 1, %v1629_v3  ;;  %s1515_s17 = smov (!%p301_p9), 1   ;;  %s1516_s21 = smov (!%p301_p9), 15   ;;  %vm430_vm4 = vcmask (!%p301_p9), 7168   ;;  %vm442_vm5 = vcmask (!%p301_p9), 121856  }
  0x12   : > { %s1517_s22 = smov (!%p301_p9), 17   ;;  %s1518_s23 = smov (!%p301_p9), 111   ;;  %vm382_vm6 = vcmask (!%p301_p9), 908288   ;;  %vm493_vm7 = vcmask (!%p301_p9), 916480   ;;  %vm481_vm8 = vcmask (!%p301_p9), 1031168   ;;  %vm534_vm9 = vcmask (!%p301_p9), 777216  }
  0x13   : > { %v394_v7 = vrot.slane (!%p301_p9), %v1158_v2, %v372_v5  ;;  %v373_v8 = vrot.slane (!%p301_p9), %v351_v4, %v372_v5  ;;  %v398_v9 = vrot.slane (!%p301_p9), %v1158_v2, %v376_v6  ;;  %v377_v10 = vrot.slane (!%p301_p9), %v351_v4, %v376_v6  ;;  %s1519_s24 = smov (!%p301_p9), 112   ;;  %s1521_s29 = smov (!%p301_p9), 95  }
  0x14   : > { %s1522_s14 = smov (!%p301_p9), 110   ;;  %v1525_v6 = vmov (!%p301_p9), 0   ;;  %vm510_vm10 = vcmask (!%p301_p9), 900096   ;;  %vm522_vm11 = vcmask (!%p301_p9), 785408   ;;  %vm546_vm12 = vcmask (!%p301_p9), 769024  }
  0x15   : > { %s1640_s25 = scalar_select %p341_p10, %s1599_s13, 1  ;;  %399 = vrot.lane.b32.xlu0 %v394_v7, %s1513_s27  ;;  %411 = vrot.lane.b32.xlu1 %v373_v8, %s1514_s28  ;;  %vm649_vm13 = vcmask 588800  }
  0x16   : > { %v1660_v16 = vld [vmem:[#allocation2] sm:$0xff]  ;;  %1350 = vset.pattern.permute.xlu1 %v1525_v6  ;;  %1446 = vset.pattern.permute.xlu0 %v1525_v6 }
  0x17   : > { %s1988_s26 = sshll.u32 %s1640_s25, 3  ;;  %v425_v27 = vld [vmem:[#allocation2 + $0x18] sm:$0xff] }
  0x18   : > { %s345_s16 = scalar_lea.vmem %s1979_s1, %s1988_s26 }
  0x19   : > { %v358_v11 = vld [vmem:[%s345_s16] sm:$0x77]  ;;  %401 = vrot.lane.b32.xlu0 %v398_v9, %s1513_s27  ;;  %413 = vrot.lane.b32.xlu1 %v377_v10, %s1514_s28  ;;  %s1520_s27 = smov 126   ;;  %s1523_s16 = smov 96  }
  0x1a   : > { %v360_v12 = vcombine.high %v358_v11, %v358_v11  ;;  %362 = vst [vmem:[#allocation2 + $0x8] sm:$0x7] %v358_v11 }
  0x1c   : > { %363 = vst [vmem:[#allocation2 + $0x10] sm:$0x7] %v360_v12 }
  0x1d   : > { %426 = vrot.lane.b32.xlu0 %v394_v7, %s1515_s17  ;;  %428 = vrot.lane.b32.xlu1 %v398_v9, %s1515_s17  ;;  %s1524_s17 = smov 94  }
  0x21   : > { %438 = vrot.lane.b32.xlu0 %v373_v8, %s1516_s21  ;;  %440 = vrot.lane.b32.xlu1 %v377_v10, %s1516_s21  ;;  %v1652_v13 = vld [vmem:[#allocation2 + $0x8] sm:$0xff] }
  0x23   : > { %v1654_v14 = vld [vmem:[#allocation2 + $0x10] sm:$0xff] }
  0x24   : > { %v1255_v15 = vpack.i.bf16 %v1654_v14, %v1652_v13 }
  0x25   : > { %450 = vrot.lane.b32.xlu0 %v394_v7, %s1517_s22  ;;  %452 = vrot.lane.b32.xlu1 %v398_v9, %s1517_s22 }
  0x29   : > { %378 = vrot.lane.b32.xlu0 %v373_v8, %s1518_s23  ;;  %380 = vrot.lane.b32.xlu1 %v377_v10, %s1518_s23 }
  0x2d   : > { %1256 = vrot.lane.b32.xlu0 %v1255_v15, %s1514_s28  ;;  %464 = vrot.lane.b32.xlu1 %v1660_v16, %s1514_s28 }
  0x31   : > { %1261 = vrot.lane.b32.xlu0 %v1255_v15, %s1518_s23 }
  0x87   : > { %v1666_v17 = vpop.permute.xlu0 %399  ;;  %v1668_v18 = vpop.permute.xlu1 %411 }
  0x88   : > { %v408_v19 = vmul.f32 %v1666_v17, %v1660_v16  ;;  %v420_v20 = vmul.f32 %v1668_v18, %v1660_v16 }
  0x8a   : > { %487 = vrot.lane.b32.xlu1 %v420_v20, %s1519_s24  ;;  %475 = vrot.lane.b32.xlu0 %v408_v19, %s1520_s27 }
  0x8b   : > { %v1676_v21 = vpop.permute.xlu0 %401  ;;  %v1678_v22 = vpop.permute.xlu1 %413 }
  0x8c   : > { %v1683_v23 = vsel %vm415_vm2, %v1668_v18, %v1678_v22  ;;  %v422_v24 = vmul.f32 %v1678_v22, %v1654_v14  ;;  %v1689_v25 = vsel %vm403_vm3, %v1666_v17, %v1676_v21  ;;  %v410_v28 = vmul.f32 %v1676_v21, %v1654_v14 }
  0x8d   : > { %v421_v26 = vmul.f32 %v1683_v23, %v1652_v13  ;;  %v409_v32 = vmul.f32 %v1689_v25, %v1652_v13 }
  0x8e   : > { %1271 = vrot.lane.b32.xlu1 %v1255_v15, %s1521_s29 }
  0x8f   : > { %v1696_v29 = vpop.permute.xlu0 %426  ;;  %v1698_v30 = vpop.permute.xlu1 %428  ;;  %v1275_v31 = vpack.i.bf16 %v422_v24, %v421_v26  ;;  %v1265_v42 = vpack.i.bf16 %v410_v28, %v409_v32 }
  0x90   : > { %v435_v33 = vmul.f32 %v1696_v29, %v1652_v13  ;;  %v1706_v34 = vsel %vm430_vm4, %v1696_v29, %v1698_v30  ;;  %v437_v35 = vmul.f32 %v1698_v30, %v425_v27 }
  0x91   : > { %v436_v36 = vmul.f32 %v1706_v34, %v1654_v14 }
  0x92   : > { %508 = vrot.lane.b32.xlu0 %v437_v35, %s1522_s14  ;;  %1276 = vrot.lane.b32.xlu1 %v1275_v31, %s1519_s24 }
  0x93   : > { %v1713_v37 = vpop.permute.xlu0 %438  ;;  %v1715_v38 = vpop.permute.xlu1 %440  ;;  %v1280_v39 = vpack.i.bf16 %v436_v36, %v435_v33 }
  0x94   : > { %v447_v40 = vmul.f32 %v1713_v37, %v1652_v13  ;;  %v1721_v41 = vsel %vm442_vm5, %v1713_v37, %v1715_v38  ;;  %v449_v44 = vmul.f32 %v1715_v38, %v425_v27 }
  0x95   : > { %v448_v43 = vmul.f32 %v1721_v41, %v1654_v14 }
  0x96   : > { %1281 = vrot.lane.b32.xlu1 %v1280_v39, %s1522_s14  ;;  %1266 = vrot.lane.b32.xlu0 %v1265_v42, %s1520_s27 }
  0x97   : > { %v1285_v45 = vpack.i.bf16 %v448_v43, %v447_v40  ;;  %v1728_v46 = vpop.permute.xlu0 %450  ;;  %v1730_v47 = vpop.permute.xlu1 %452 }
  0x98   : > { %v458_v48 = vmul.f32 %v1728_v46, %v1652_v13  ;;  %v1739_v49 = vsel %vm356_vm1, %v1728_v46, %v1730_v47  ;;  %v460_v53 = vmul.f32 %v1730_v47, %v425_v27 }
  0x99   : > { %v459_v54 = vmul.f32 %v1739_v49, %v1654_v14 }
  0x9a   : > { %1286 = vrot.lane.b32.xlu1 %v1285_v45, %s1523_s16  ;;  %520 = vrot.lane.b32.xlu0 %v449_v44, %s1523_s16 }
  0x9b   : > { %v1741_v50 = vpop.permute.xlu0 %378  ;;  %v1743_v51 = vpop.permute.xlu1 %380 }
  0x9c   : > { %v1748_v52 = vsel %vm382_vm6, %v1741_v50, %v1743_v51  ;;  %v389_v56 = vmul.f32 %v1743_v51, %v1654_v14  ;;  %v387_v61 = vmul.f32 %v1741_v50, %v1660_v16 }
  0x9d   : > { %v388_v55 = vmul.f32 %v1748_v52, %v1652_v13 }
  0x9e   : > { %532 = vrot.lane.b32.xlu0 %v425_v27, %s1521_s29  ;;  %540 = vrot.lane.b32.xlu1 %v458_v48, %s1524_s17 }
  0x9f   : > { %v1257_v57 = vpop.permute.xlu0 %1256  ;;  %v465_v60 = vpop.permute.xlu1 %464  ;;  %v1290_v63 = vpack.i.bf16 %v389_v56, %v388_v55 }
  0xa0   : > { %v1259_v58 = vunpack.i.h.bf16 %v1257_v57  ;;  %v1258_v59 = vunpack.i.l.bf16 %v1257_v57 }
  0xa2   : > { %542 = vrot.lane.b32.xlu0 %v459_v54, %s1524_s17  ;;  %544 = vrot.lane.b32.xlu1 %v460_v53, %s1524_s17  ;;  %v471_v62 = vsel %vm415_vm2, %v1258_v59, %v1259_v58  ;;  %v470_v1 = vsel %vm415_vm2, %v465_v60, %v1258_v59 }
  0xa3   : > { %v1300_v0 = vpack.i.bf16 %v1259_v58, %v471_v62  ;;  %v1262_v2 = vpop.permute.xlu0 %1261  ;;  %v1295_v7 = vpack.i.bf16 %v470_v1, %v387_v61 }
  0xa4   : > { %v1264_v4 = vunpack.i.h.bf16 %v1262_v2  ;;  %v1263_v5 = vunpack.i.l.bf16 %v1262_v2 }
  0xa6   : > { %1291 = vrot.lane.b32.xlu0 %v1290_v63, %s1517_s22  ;;  %1301 = vrot.lane.b32.xlu1 %v1300_v0, %s1517_s22  ;;  %v500_v8 = vsel %vm382_vm6, %v1263_v5, %v1264_v4 }
  0xa7   : > { %v1305_v9 = vpack.i.bf16 %v1264_v4, %v500_v8 }
  0xaa   : > { %1296 = vrot.lane.b32.xlu0 %v1295_v7, %s1517_s22 }
  0xae   : > { %1306 = vrot.lane.b32.xlu0 %v1305_v9, %s1517_s22 }
  0xfc   : > { %v488_v10 = vpop.permute.xlu1 %487  ;;  %v476_v11 = vpop.permute.xlu0 %475 }
 0x100   : > { %v1272_v12 = vpop.permute.xlu1 %1271 }
 0x101   : > { %v1274_v35 = vunpack.i.h.bf16 %v1272_v12  ;;  %v1273_v36 = vunpack.i.l.bf16 %v1272_v12 }
 0x103   : > { %v535_v48 = vsel %vm534_vm9, %v1273_v36, %v1274_v35 }
 0x104   : > { %v509_v13 = vpop.permute.xlu0 %508  ;;  %v1277_v14 = vpop.permute.xlu1 %1276 }
 0x105   : > { %v1279_v15 = vunpack.i.h.bf16 %v1277_v14  ;;  %v1278_v16 = vunpack.i.l.bf16 %v1277_v14 }
 0x107   : > { %v495_v19 = vsel %vm493_vm7, %v1278_v16, %v1279_v15  ;;  %v494_v45 = vsel %vm493_vm7, %v488_v10, %v1278_v16 }
 0x108   : > { %v1315_v20 = vpack.i.bf16 %v1279_v15, %v495_v19  ;;  %v1282_v24 = vpop.permute.xlu1 %1281  ;;  %v1267_v26 = vpop.permute.xlu0 %1266  ;;  %v1792_v19 = vld [vmem:[#allocation3] sm:$0xff] }
 0x109   : > { %v1283_v27 = vunpack.i.l.bf16 %v1282_v24  ;;  %v1269_v28 = vunpack.i.h.bf16 %v1267_v26  ;;  %v1268_v31 = vunpack.i.l.bf16 %v1267_v26  ;;  %v1284_v43 = vunpack.i.h.bf16 %v1282_v24 }
 0x10a   : > { %1316 = vrot.lane.b32.xlu0 %v1315_v20, %s1517_s22  ;;  %v736_v26 = vmul.f32 %v1792_v19, %v1666_v17  ;;  %v550_v17 = vld [vmem:[%s1984_s6] sm:$0xff] }
 0x10b   : > { %v1320_v32 = vpack.i.bf16 %v1283_v27, %v1263_v5  ;;  %v483_v33 = vsel %vm481_vm8, %v1268_v31, %v1269_v28  ;;  %v482_v44 = vsel %vm481_vm8, %v476_v11, %v1268_v31  ;;  %v511_v58 = vsel %vm510_vm10, %v1283_v27, %v1284_v43  ;;  %v1797_v27 = vld [vmem:[#allocation3 + $0x18] sm:$0xff] }
 0x10c   : > { %v1310_v39 = vpack.i.bf16 %v1269_v28, %v483_v33  ;;  %v1287_v40 = vpop.permute.xlu1 %1286  ;;  %v521_v42 = vpop.permute.xlu0 %520  ;;  %v1330_v54 = vpack.i.bf16 %v494_v45, %v482_v44  ;;  %v512_v59 = vsel %vm510_vm10, %v1284_v43, %v509_v13 }
 0x10d   : > { %v1289_v56 = vunpack.i.h.bf16 %v1287_v40  ;;  %v1288_v61 = vunpack.i.l.bf16 %v1287_v40  ;;  %v1335_v63 = vpack.i.bf16 %v512_v59, %v511_v58 }
 0x10e   : > { %1311 = vrot.lane.b32.xlu1 %v1310_v39, %s1517_s22  ;;  %1321 = vrot.lane.b32.xlu0 %v1320_v32, %s1517_s22 }
 0x10f   : > { %v523_v1 = vsel %vm522_vm11, %v1288_v61, %v1289_v56  ;;  %v524_v2 = vsel %vm522_vm11, %v1289_v56, %v521_v42  ;;  %v1345_v14 = vpack.i.bf16 %v1273_v36, %v1288_v61  ;;  %v739_v36 = vmul.f32 %v1792_v19, %v1668_v18 }
 0x110   : > { %v533_v53 = vpop.permute.xlu0 %532  ;;  %v541_v55 = vpop.permute.xlu1 %540  ;;  %v1340_v5 = vpack.i.bf16 %v524_v2, %v523_v1 }
 0x111   : > { %v536_v57 = vsel %vm534_vm9, %v1274_v35, %v533_v53  ;;  %v747_v35 = vmul.f32 %v1797_v27, %v1698_v30 }
 0x112   : > { %v1325_v60 = vpack.i.bf16 %v536_v57, %v535_v48  ;;  %1331 = vrot.lane.b32.xlu1 %v1330_v54, %s1517_s22 }
 0x114   : > { %1326 = vrot.lane.b32.xlu0 %v1325_v60, %s1517_s22  ;;  %v543_v62 = vpop.permute.xlu0 %542  ;;  %v545_v0 = vpop.permute.xlu1 %544 }
 0x115   : > { %v547_v4 = vsel %vm546_vm12, %v541_v55, %v543_v62  ;;  %v548_v28 = vsel %vm546_vm12, %v543_v62, %v545_v0 }
 0x116   : > { %1336 = vrot.lane.b32.xlu1 %v1335_v63, %s1517_s22 }
 0x118   : > { %609 = vrot.lane.b32.xlu0 %v547_v4, %s1517_s22  ;;  %v1292_v6 = vpop.permute.xlu0 %1291  ;;  %v1302_v7 = vpop.permute.xlu1 %1301 }
 0x119   : > { %v1294_v8 = vunpack.i.h.bf16 %v1292_v6  ;;  %v1293_v9 = vunpack.i.l.bf16 %v1292_v6  ;;  %v1304_v10 = vunpack.i.h.bf16 %v1302_v7  ;;  %v1303_v11 = vunpack.i.l.bf16 %v1302_v7 }
 0x11a   : > { %1341 = vrot.lane.b32.xlu1 %v1340_v5, %s1517_s22 }
 0x11b   : > { %v614_v12 = vsel %vm356_vm1, %v1293_v9, %v1294_v8  ;;  %v616_v13 = vsel %vm356_vm1, %v1303_v11, %v1304_v10 }
 0x11c   : > { %607 = vrot.lane.b32.xlu0 %v541_v55, %s1517_s22  ;;  %v1297_v15 = vpop.permute.xlu0 %1296  ;;  %v1169_v16 = vpack.c.bf16 %v616_v13, %v614_v12 }
 0x11d   : > { %v1299_v20 = vunpack.i.h.bf16 %v1297_v15  ;;  %v1298_v24 = vunpack.i.l.bf16 %v1297_v15 }
 0x11e   : > { %1346 = vrot.lane.b32.xlu1 %v1345_v14, %s1517_s22  ;;  %1170 = vmatprep.subr.bf16.mxu0 %v1169_v16 }
 0x11f   : > { %v613_v31 = vsel %vm356_vm1, %v1298_v24, %v1293_v9  ;;  %v615_v32 = vsel %vm356_vm1, %v1299_v20, %v1303_v11 }
 0x120   : > { %768 = vrot.lane.b32.xlu0 %v736_v26, %s1520_s27  ;;  %v1171_v33 = vpack.c.bf16 %v615_v32, %v613_v31  ;;  %v1307_v39 = vpop.permute.xlu0 %1306 }
 0x121   : > { %v1309_v59 = vunpack.i.h.bf16 %v1307_v39  ;;  %v1308_v18 = vunpack.i.l.bf16 %v1307_v39 }
 0x122   : > { %611 = vrot.lane.b32.xlu1 %v548_v28, %s1517_s22  ;;  %1172 = vmatpush1.bf16.msra.mxu0 %v1171_v33 }
 0x123   : > { %v622_v6 = vsel %vm356_vm1, %v1308_v18, %v1309_v59 }
 0x124   : > { %799 = vrot.lane.b32.xlu0 %v747_v35, %s1522_s14 }
 0x126   : > { %553 = vperm.xlu1 %1350, %v550_v17  }
 0x12a   : > { %757 = vrot.lane.b32.xlu1 %v1792_v19, %s1514_s28 }
 0x12e   : > { %779 = vrot.lane.b32.xlu1 %v739_v36, %s1519_s24 }
 0x17c   : > { %v1317_v30 = vpop.permute.xlu0 %1316 }
 0x17d   : > { %v1319_v40 = vunpack.i.h.bf16 %v1317_v30  ;;  %v1318_v42 = vunpack.i.l.bf16 %v1317_v30 }
 0x17f   : > { %v620_v54 = vsel %vm356_vm1, %v1318_v42, %v1319_v40 }
 0x180   : > { %v1312_v43 = vpop.permute.xlu1 %1311  ;;  %v1322_v48 = vpop.permute.xlu0 %1321 }
 0x181   : > { %v1314_v44 = vunpack.i.h.bf16 %v1312_v43  ;;  %v1313_v45 = vunpack.i.l.bf16 %v1312_v43  ;;  %v1323_v60 = vunpack.i.l.bf16 %v1322_v48  ;;  %v1324_v2 = vunpack.i.h.bf16 %v1322_v48 }
 0x183   : > { %v618_v53 = vsel %vm356_vm1, %v1313_v45, %v1314_v44  ;;  %v621_v7 = vsel %vm356_vm1, %v1323_v60, %v1308_v18 }
 0x184   : > { %v1332_v55 = vpop.permute.xlu1 %1331  ;;  %v1173_v56 = vpack.c.bf16 %v620_v54, %v618_v53 }
 0x185   : > { %v1334_v57 = vunpack.i.h.bf16 %v1332_v55  ;;  %v1333_v58 = vunpack.i.l.bf16 %v1332_v55 }
 0x186   : > { %1174 = vmatprep.subr.bf16.mxu0 %v1173_v56  ;;  %v1327_v63 = vpop.permute.xlu0 %1326 }
 0x187   : > { %v617_v61 = vsel %vm356_vm1, %v1333_v58, %v1313_v45  ;;  %v619_v62 = vsel %vm356_vm1, %v1334_v57, %v1318_v42  ;;  %v1329_v8 = vunpack.i.h.bf16 %v1327_v63  ;;  %v1328_v9 = vunpack.i.l.bf16 %v1327_v63  ;;  %v549_v42 = vld [vmem:[%s1983_s5] sm:$0xff] }
 0x188   : > { %v1337_v0 = vpop.permute.xlu1 %1336  ;;  %v1175_v1 = vpack.c.bf16 %v619_v62, %v617_v61 }
 0x189   : > { %v1339_v4 = vunpack.i.h.bf16 %v1337_v0  ;;  %v1338_v5 = vunpack.i.l.bf16 %v1337_v0  ;;  %v628_v24 = vsel %vm356_vm1, %v1328_v9, %v1329_v8 }
 0x18a   : > { %1176 = vmatpush1.bf16.msra.mxu0 %v1175_v1  ;;  %v610_v33 = vpop.permute.xlu0 %609 }
 0x18b   : > { %v624_v10 = vsel %vm356_vm1, %v1338_v5, %v1339_v4  ;;  %v623_v11 = vsel %vm356_vm1, %v1324_v2, %v1338_v5 }
 0x18c   : > { %v1342_v12 = vpop.permute.xlu1 %1341  ;;  %v1177_v13 = vpack.c.bf16 %v624_v10, %v622_v6  ;;  %v1179_v14 = vpack.c.bf16 %v623_v11, %v621_v7 }
 0x18d   : > { %v1344_v15 = vunpack.i.h.bf16 %v1342_v12  ;;  %v1343_v16 = vunpack.i.l.bf16 %v1342_v12 }
 0x18e   : > { %1178 = vmatprep.subr.bf16.mxu0 %v1177_v13  ;;  %v608_v40 = vpop.permute.xlu0 %607 }
 0x18f   : > { %1180 = vmatpush1.bf16.msra.mxu0 %v1179_v14  ;;  %v626_v20 = vsel %vm356_vm1, %v1343_v16, %v1344_v15  ;;  %v629_v43 = vsel %vm356_vm1, %v608_v40, %v610_v33 }
 0x190   : > { %v1347_v26 = vpop.permute.xlu1 %1346  ;;  %v1181_v28 = vpack.c.bf16 %v628_v24, %v626_v20 }
 0x191   : > { %v1349_v31 = vunpack.i.h.bf16 %v1347_v26  ;;  %v1348_v32 = vunpack.i.l.bf16 %v1347_v26 }
 0x192   : > { %1182 = vmatprep.subr.bf16.mxu0 %v1181_v28 }
 0x193   : > { %v625_v35 = vsel %vm356_vm1, %v1348_v32, %v1343_v16  ;;  %v627_v17 = vsel %vm356_vm1, %v1349_v31, %v1328_v9  ;;  %v733_v9 = vmul.f32 %v1792_v19, %v1741_v50 }
 0x194   : > { %v612_v36 = vpop.permute.xlu1 %611  ;;  %v1183_v39 = vpack.c.bf16 %v627_v17, %v625_v35 }
 0x195   : > { %v630_v30 = vsel %vm356_vm1, %v610_v33, %v612_v36 }
 0x196   : > { %1184 = vmatpush1.bf16.msra.mxu0 %v1183_v39 }
 0x197   : > { %669 = vmatprep.subr.mxu0 %v630_v30 }
 0x19a   : > { %670 = vmatpush1.msra.mxu0 %v629_v43 }
 0x19b   : > { %1159 = vmatmul.mubr.msk.f32.vlgmr.msra.gmra.mrb[0].mxu0 %vm649_vm13, %v549_v42 }
 0x1a5   : > { %v554_v44 = vpop.permute.xlu1 %553 }
 0x26e   : > { %v719_v45 = vpop.f32.mrb[0].mxu0 }
 0x26f   : > { %v720_v48 = vadd.f32 %v719_v45, %v554_v44  ;;  %v721_v53 = vpop.f32.mrb[1].mxu0 }
 0x270   : > { %v722_v54 = vadd.f32 %v721_v53, %v554_v44 }
 0x271   : > { %v724_v55 = vmax.f32 %v720_v48, 0.0 }
 0x272   : > { %v725_v56 = vmax.f32 %v722_v54, 0.0 }
 0x273   : > { %v740_v57 = vmul.f32 %v724_v55, %v1683_v23  ;;  %v745_v58 = vmul.f32 %v724_v55, %v1696_v29  ;;  %v737_v59 = vmul.f32 %v724_v55, %v1689_v25  ;;  %v748_v18 = vmul.f32 %v724_v55, %v1713_v37 }
 0x274   : > { %v1366_v60 = vpack.i.bf16 %v725_v56, %v724_v55  ;;  %v741_v61 = vmul.f32 %v725_v56, %v1678_v22  ;;  %v746_v62 = vmul.f32 %v725_v56, %v1706_v34  ;;  %v738_v63 = vmul.f32 %v725_v56, %v1676_v21 }
 0x275   : > { %v749_v0 = vmul.f32 %v725_v56, %v1721_v41  ;;  %v734_v1 = vmul.f32 %v724_v55, %v1748_v52  ;;  %v735_v37 = vmul.f32 %v725_v56, %v1743_v51  ;;  %v750_v21 = vmul.f32 %v1797_v27, %v1715_v38  ;;  %v769_v38 = vpop.permute.xlu0 %768  ;;  %v758_v51 = vpop.permute.xlu1 %757 }
 0x276   : > { %1367 = vrot.lane.b32.xlu1 %v1366_v60, %s1521_s29  ;;  %1352 = vrot.lane.b32.xlu0 %v1366_v60, %s1514_s28  ;;  %v1371_v23 = vpack.i.bf16 %v741_v61, %v740_v57  ;;  %v1376_v29 = vpack.i.bf16 %v746_v62, %v745_v58  ;;  %v1361_v25 = vpack.i.bf16 %v738_v63, %v737_v59 }
 0x277   : > { %v1381_v2 = vpack.i.bf16 %v749_v0, %v748_v18  ;;  %v1386_v4 = vpack.i.bf16 %v735_v37, %v734_v1  ;;  %v751_v22 = vmul.f32 %v724_v55, %v1728_v46  ;;  %v753_v34 = vmul.f32 %v1797_v27, %v1730_v47 }
 0x278   : > { %v752_v41 = vmul.f32 %v725_v56, %v1739_v49 }
 0x279   : > { %v800_v52 = vpop.permute.xlu0 %799  ;;  %v780_v46 = vpop.permute.xlu1 %779 }
 0x27a   : > { %1357 = vrot.lane.b32.xlu0 %v1366_v60, %s1518_s23  ;;  %1372 = vrot.lane.b32.xlu1 %v1371_v23, %s1519_s24  ;;  %s338_s23 = sand.u32 1, %s1502_s10  }
 0x27b   : > { %s1153_s24 = sshll.u32 %s338_s23, 3 }
 0x27e   : > { %1377 = vrot.lane.b32.xlu1 %v1376_v29, %s1522_s14  ;;  %1362 = vrot.lane.b32.xlu0 %v1361_v25, %s1520_s27  ;;  %s340_s27 = scalar_lea.vmem [#allocation5], %s1153_s24 }
 0x282   : > { %1382 = vrot.lane.b32.xlu1 %v1381_v2, %s1523_s16  ;;  %810 = vrot.lane.b32.xlu0 %v750_v21, %s1523_s16  ;;  %v1017_v2 = vld [vmem:[%s1981_s3] sm:$0xf] }
 0x283   : > { %v1031_v21 = vld [vmem:[%s1982_s4] sm:$0xf] }
 0x286   : > { %828 = vrot.lane.b32.xlu1 %v751_v22, %s1524_s17  ;;  %821 = vrot.lane.b32.xlu0 %v1797_v27, %s1521_s29  ;;  %s1078_s29 = sshll.u32 %s340_s27, 4  ;;  %s1938_s29 = int_to_ptr.vmem [resolvable:$true] %s1078_s29 }
 0x287   : > { %s1448_s26 = scalar_lea.vmem %s1938_s29, 128 }
 0x288   : > { %p1449_p11 = scmp.ne.s32.totalorder %s1938_s29, %s1448_s26 }
 0x28a   : > { %832 = vrot.lane.b32.xlu1 %v753_v34, %s1524_s17  ;;  %830 = vrot.lane.b32.xlu0 %v752_v41, %s1524_s17  ;;  %s1991_s17 = sshll.u32 %s1640_s25, 3  ;;  %s1168_s25 = sshll.u32 %s1599_s13, 7 }
 0x28b   : > { %s350_s28 = scalar_lea.vmem %s1980_s2, %s1991_s17  ;;  %s1936_s16 = scalar_lea.hbm %s1987_s9, %s1168_s25 }
 0x28c   : > { %s1064_s17 = scalar_lea.sflag [#allocation6], %s338_s23  ;;  %p1450_p12 = pnand %p1449_p11, %p1616_p5 }
 0x28d   : > { %s1527_s13 = smov [#allocation5]  }
 0x28e   : > { %1387 = vrot.lane.b32.xlu0 %v1386_v4, %s1517_s22  ;;  %v837_v4 = vld [vmem:[%s1986_s8] sm:$0xff]  ;;  %p1451_p13 = pneg %p1450_p12  ;;  %s1452_s21 = sshll.u32 %s1527_s13, 4  ;;  %s1453_s21 = int_to_ptr.vmem [resolvable:$false] %s1452_s21 }
 0x28f   : > { %p1455_p0 = scmp.lt.s32.totalorder %s1938_s29, %s1453_s21 }
 0x2e8   : > { %v1368_v5 = vpop.permute.xlu1 %1367  ;;  %v1353_v6 = vpop.permute.xlu0 %1352 }
 0x2e9   : > { %v1355_v7 = vunpack.i.h.bf16 %v1353_v6  ;;  %v1354_v8 = vunpack.i.l.bf16 %v1353_v6  ;;  %v1370_v43 = vunpack.i.h.bf16 %v1368_v5  ;;  %v1369_v44 = vunpack.i.l.bf16 %v1368_v5 }
 0x2eb   : > { %v764_v47 = vsel %vm415_vm2, %v1354_v8, %v1355_v7  ;;  %v763_v49 = vsel %vm415_vm2, %v758_v51, %v1354_v8  ;;  %v823_v59 = vsel %vm534_vm9, %v1369_v44, %v1370_v43 }
 0x2ec   : > { %v1396_v27 = vpack.i.bf16 %v1355_v7, %v764_v47  ;;  %v1358_v10 = vpop.permute.xlu0 %1357  ;;  %v1373_v11 = vpop.permute.xlu1 %1372  ;;  %v1391_v12 = vpack.i.bf16 %v763_v49, %v733_v9 }
 0x2ed   : > { %v1360_v13 = vunpack.i.h.bf16 %v1358_v10  ;;  %v1359_v14 = vunpack.i.l.bf16 %v1358_v10  ;;  %v1375_v15 = vunpack.i.h.bf16 %v1373_v11  ;;  %v1374_v16 = vunpack.i.l.bf16 %v1373_v11 }
 0x2ee   : > { %1397 = vrot.lane.b32.xlu1 %v1396_v27, %s1517_s22  ;;  %1392 = vrot.lane.b32.xlu0 %v1391_v12, %s1517_s22 }
 0x2ef   : > { %v791_v20 = vsel %vm382_vm6, %v1359_v14, %v1360_v13  ;;  %v786_v26 = vsel %vm493_vm7, %v1374_v16, %v1375_v15  ;;  %v785_v33 = vsel %vm493_vm7, %v780_v46, %v1374_v16 }
 0x2f0   : > { %v1401_v24 = vpack.i.bf16 %v1360_v13, %v791_v20  ;;  %v1378_v50 = vpop.permute.xlu1 %1377  ;;  %v1363_v19 = vpop.permute.xlu0 %1362  ;;  %v1416_v35 = vpack.i.bf16 %v1375_v15, %v786_v26 }
 0x2f1   : > { %v1365_v28 = vunpack.i.h.bf16 %v1363_v19  ;;  %v1364_v31 = vunpack.i.l.bf16 %v1363_v19  ;;  %v1380_v17 = vunpack.i.h.bf16 %v1378_v50  ;;  %v1379_v36 = vunpack.i.l.bf16 %v1378_v50 }
 0x2f2   : > { %1402 = vrot.lane.b32.xlu0 %v1401_v24, %s1517_s22 }
 0x2f3   : > { %v774_v32 = vsel %vm481_vm8, %v769_v38, %v1364_v31  ;;  %v775_v40 = vsel %vm481_vm8, %v1364_v31, %v1365_v28  ;;  %v1421_v45 = vpack.i.bf16 %v1379_v36, %v1359_v14  ;;  %v801_v54 = vsel %vm510_vm10, %v1379_v36, %v1380_v17 }
 0x2f4   : > { %v811_v39 = vpop.permute.xlu0 %810  ;;  %v1406_v30 = vpack.i.bf16 %v785_v33, %v774_v32  ;;  %v1383_v42 = vpop.permute.xlu1 %1382  ;;  %v1411_v48 = vpack.i.bf16 %v1365_v28, %v775_v40  ;;  %v802_v58 = vsel %vm510_vm10, %v1380_v17, %v800_v52 }
 0x2f5   : > { %v1385_v55 = vunpack.i.h.bf16 %v1383_v42  ;;  %v1384_v56 = vunpack.i.l.bf16 %v1383_v42  ;;  %v1431_v60 = vpack.i.bf16 %v802_v58, %v801_v54 }
 0x2f6   : > { %1407 = vrot.lane.b32.xlu1 %v1406_v30, %s1517_s22  ;;  %1417 = vrot.lane.b32.xlu0 %v1416_v35, %s1517_s22 }
 0x2f7   : > { %v812_v61 = vsel %vm522_vm11, %v1384_v56, %v1385_v55  ;;  %v813_v62 = vsel %vm522_vm11, %v1385_v55, %v811_v39  ;;  %v1441_v29 = vpack.i.bf16 %v1369_v44, %v1384_v56 }
 0x2f8   : > { %v822_v53 = vpop.permute.xlu0 %821  ;;  %v1436_v0 = vpack.i.bf16 %v813_v62, %v812_v61  ;;  %v829_v1 = vpop.permute.xlu1 %828 }
 0x2f9   : > { %v824_v57 = vsel %vm534_vm9, %v1370_v43, %v822_v53 }
 0x2fa   : > { %1412 = vrot.lane.b32.xlu1 %v1411_v48, %s1517_s22  ;;  %1422 = vrot.lane.b32.xlu0 %v1421_v45, %s1517_s22  ;;  %v1426_v18 = vpack.i.bf16 %v824_v57, %v823_v59 }
 0x2fc   : > { %v831_v63 = vpop.permute.xlu0 %830  ;;  %v833_v25 = vpop.permute.xlu1 %832 }
 0x2fd   : > { %v834_v23 = vsel %vm546_vm12, %v829_v1, %v831_v63  ;;  %v835_v37 = vsel %vm546_vm12, %v831_v63, %v833_v25 }
 0x2fe   : > { %1432 = vrot.lane.b32.xlu1 %v1431_v60, %s1517_s22  ;;  %1427 = vrot.lane.b32.xlu0 %v1426_v18, %s1517_s22 }
 0x300   : > { %v1388_v22 = vpop.permute.xlu0 %1387 }
 0x301   : > { %v1390_v34 = vunpack.i.h.bf16 %v1388_v22  ;;  %v1389_v41 = vunpack.i.l.bf16 %v1388_v22 }
 0x302   : > { %1437 = vrot.lane.b32.xlu1 %v1436_v0, %s1517_s22  ;;  %896 = vrot.lane.b32.xlu0 %v834_v23, %s1517_s22 }
 0x303   : > { %v901_v7 = vsel %vm356_vm1, %v1389_v41, %v1390_v34  ;;  %v836_v34 = vld [vmem:[%s1985_s7] sm:$0xff] }
 0x306   : > { %1442 = vrot.lane.b32.xlu1 %v1441_v29, %s1517_s22  ;;  %894 = vrot.lane.b32.xlu0 %v829_v1, %s1517_s22 }
 0x30a   : > { %898 = vrot.lane.b32.xlu1 %v835_v37, %s1517_s22  ;;  %1020 = vperm.xlu0 %1446, %v1017_v2  }
 0x30e   : > { %840 = vperm.xlu1 %1350, %v837_v4  }
 0x312   : > { %1034 = vperm.xlu1 %1350, %v1031_v21  }
 0x360   : > { %v1398_v38 = vpop.permute.xlu1 %1397  ;;  %v1393_v51 = vpop.permute.xlu0 %1392 }
 0x361   : > { %v1400_v52 = vunpack.i.h.bf16 %v1398_v38  ;;  %v1399_v46 = vunpack.i.l.bf16 %v1398_v38  ;;  %v1395_v5 = vunpack.i.h.bf16 %v1393_v51  ;;  %v1394_v6 = vunpack.i.l.bf16 %v1393_v51 }
 0x362   : > { %v1526_v38 = vmov 839922192  }
 0x363   : > { %v903_v8 = vsel %vm356_vm1, %v1399_v46, %v1400_v52  ;;  %v900_v9 = vsel %vm356_vm1, %v1394_v6, %v1389_v41  ;;  %v902_v47 = vsel %vm356_vm1, %v1395_v5, %v1399_v46  ;;  %v1023_v51 = vunpack.c.l.s4 %v1526_v38 }
 0x364   : > { %v1403_v49 = vpop.permute.xlu0 %1402  ;;  %v1185_v27 = vpack.c.bf16 %v903_v8, %v901_v7  ;;  %v1187_v10 = vpack.c.bf16 %v902_v47, %v900_v9  ;;  %v1016_v8 = vld [vmem:[%s350_s28] sm:$0xff]  ;;  %s1454_s28 = scalar_lea.vmem %s1453_s21, 256 }
 0x365   : > { %v1405_v26 = vunpack.i.h.bf16 %v1403_v49  ;;  %v1404_v28 = vunpack.i.l.bf16 %v1403_v49  ;;  %v1024_v52 = vunpack.c.0.s8 %v1023_v51  ;;  %p1456_p1 = scmp.lt.s32.totalorder %s1454_s28, %s1448_s26 }
 0x366   : > { %1186 = vmatprep.subr.bf16.mxu1 %v1185_v27 }
 0x367   : > { %1188 = vmatpush1.bf16.msra.mxu1 %v1187_v10  ;;  %v909_v45 = vsel %vm356_vm1, %v1404_v28, %v1405_v26  ;;  %v1027_v5 = vsub.s32 %v1024_v52, %v1629_v3  ;;  %p1457_p2 = por %p1456_p1, %p1455_p0 }
 0x368   : > { %v1408_v11 = vpop.permute.xlu1 %1407  ;;  %v1418_v12 = vpop.permute.xlu0 %1417 }
 0x369   : > { %v1410_v13 = vunpack.i.h.bf16 %v1408_v11  ;;  %v1420_v14 = vunpack.i.h.bf16 %v1418_v12  ;;  %v1419_v15 = vunpack.i.l.bf16 %v1418_v12  ;;  %v1409_v24 = vunpack.i.l.bf16 %v1408_v11  ;;  %p1458_p3 = pnand %p1457_p2, %p1451_p13 }
 0x36b   : > { %v907_v33 = vsel %vm356_vm1, %v1419_v15, %v1420_v14  ;;  %v906_v17 = vsel %vm356_vm1, %v1410_v13, %v1419_v15 }
 0x36c   : > { %v1413_v16 = vpop.permute.xlu1 %1412  ;;  %v1423_v20 = vpop.permute.xlu0 %1422 }
 0x36d   : > { %v1415_v50 = vunpack.i.h.bf16 %v1413_v16  ;;  %v1414_v19 = vunpack.i.l.bf16 %v1413_v16  ;;  %v1424_v31 = vunpack.i.l.bf16 %v1423_v20  ;;  %v1425_v42 = vunpack.i.h.bf16 %v1423_v20 }
 0x36f   : > { %v905_v32 = vsel %vm356_vm1, %v1414_v19, %v1415_v50  ;;  %v904_v35 = vsel %vm356_vm1, %v1409_v24, %v1414_v19  ;;  %v908_v48 = vsel %vm356_vm1, %v1424_v31, %v1404_v28 }
 0x370   : > { %v1433_v36 = vpop.permute.xlu1 %1432  ;;  %v1428_v39 = vpop.permute.xlu0 %1427  ;;  %v1189_v30 = vpack.c.bf16 %v907_v33, %v905_v32  ;;  %v1191_v40 = vpack.c.bf16 %v906_v17, %v904_v35 }
 0x371   : > { %v1435_v43 = vunpack.i.h.bf16 %v1433_v36  ;;  %v1434_v44 = vunpack.i.l.bf16 %v1433_v36  ;;  %v1430_v53 = vunpack.i.h.bf16 %v1428_v39  ;;  %v1429_v54 = vunpack.i.l.bf16 %v1428_v39 }
 0x372   : > { %1190 = vmatprep.subr.bf16.mxu1 %v1189_v30 }
 0x373   : > { %1192 = vmatpush1.bf16.msra.mxu1 %v1191_v40  ;;  %v911_v55 = vsel %vm356_vm1, %v1434_v44, %v1435_v43  ;;  %v910_v56 = vsel %vm356_vm1, %v1425_v42, %v1434_v44  ;;  %v915_v62 = vsel %vm356_vm1, %v1429_v54, %v1430_v53 }
 0x374   : > { %v1438_v57 = vpop.permute.xlu1 %1437  ;;  %v1193_v58 = vpack.c.bf16 %v911_v55, %v909_v45  ;;  %v1195_v59 = vpack.c.bf16 %v910_v56, %v908_v48  ;;  %v897_v63 = vpop.permute.xlu0 %896 }
 0x375   : > { %v1440_v18 = vunpack.i.h.bf16 %v1438_v57  ;;  %v1439_v60 = vunpack.i.l.bf16 %v1438_v57 }
 0x376   : > { %1194 = vmatprep.subr.bf16.mxu1 %v1193_v58 }
 0x377   : > { %1196 = vmatpush1.bf16.msra.mxu1 %v1195_v59  ;;  %v913_v61 = vsel %vm356_vm1, %v1439_v60, %v1440_v18 }
 0x378   : > { %v1443_v0 = vpop.permute.xlu1 %1442  ;;  %v1197_v1 = vpack.c.bf16 %v915_v62, %v913_v61  ;;  %v895_v22 = vpop.permute.xlu0 %894 }
 0x379   : > { %v1445_v23 = vunpack.i.h.bf16 %v1443_v0  ;;  %v1444_v29 = vunpack.i.l.bf16 %v1443_v0  ;;  %v916_v41 = vsel %vm356_vm1, %v895_v22, %v897_v63 }
 0x37a   : > { %1198 = vmatprep.subr.bf16.mxu1 %v1197_v1 }
 0x37b   : > { %v912_v25 = vsel %vm356_vm1, %v1444_v29, %v1439_v60  ;;  %v914_v2 = vsel %vm356_vm1, %v1445_v23, %v1429_v54 }
 0x37c   : > { %v899_v37 = vpop.permute.xlu1 %898  ;;  %v1199_v4 = vpack.c.bf16 %v914_v2, %v912_v25 }
 0x37d   : > { %v917_v21 = vsel %vm356_vm1, %v897_v63, %v899_v37 }
 0x37e   : > { %1200 = vmatpush1.bf16.msra.mxu1 %v1199_v4 }
 0x37f   : > { %955 = vmatprep.subr.mxu1 %v917_v21 }
 0x382   : > { %956 = vmatpush1.msra.mxu1 %v916_v41 }
 0x383   : > { %1160 = vmatmul.mubr.msk.f32.vlgmr.msra.gmra.mrb[0].mxu1 %vm649_vm13, %v836_v34 }
 0x389   : > { %v1021_v6 = vpop.permute.xlu0 %1020 }
 0x38a   : > { %v1028_v7 = vrot.slane %v1021_v6, %v1027_v5 }
 0x38c   : > { %v1030_v10 = vsub.f32 %v1016_v8, %v1028_v7 }
 0x38d   : > { %v841_v46 = vpop.permute.xlu1 %840 }
 0x391   : > { %v1035_v9 = vpop.permute.xlu1 %1034 }
 0x392   : > { %v1042_v11 = vrot.slane %v1035_v9, %v1027_v5 }
 0x394   : > { %v1044_v3 = vmul.f32 %v1042_v11, %v1030_v10 }
 0x396   : > { %v1046_v13 = vcombine.high %v1044_v3, %v1044_v3 }
 0x456   : > { %v1005_v47 = vpop.f32.mrb[0].mxu1 }
 0x457   : > { %v1006_v49 = vadd.f32 %v1005_v47, %v841_v46  ;;  %v1007_v27 = vpop.f32.mrb[1].mxu1 }
 0x458   : > { %v1008_v12 = vadd.f32 %v1007_v27, %v841_v46 }
 0x459   : > { %1010 = vst [vmem:[#allocation4] sm:$0xff] %v1006_v49 }
 0x45a   : > { %1011 = vst [vmem:[#allocation4 + $0x8] sm:$0xff] %v1008_v12 }
 0x460   : > { %v1012_v14 = vld [vmem:[#allocation4] sm:$0xf]  ;;  %v1014_v15 = vld [vmem:[#allocation4] sm:$0xf0] }
 0x461   : > { %v1013_v16 = vld [vmem:[#allocation4 + $0x8] sm:$0xf]  ;;  %v1015_v20 = vld [vmem:[#allocation4 + $0x8] sm:$0xf0]  ;;  %v1048_v24 = vmul.f32 %v1044_v3, %v1012_v14  ;;  %v1052_v50 = vrot.slane %v1014_v15, 4 }
 0x462   : > { %v1049_v19 = vmul.f32 %v1046_v13, %v1013_v16  ;;  %v1053_v26 = vrot.slane %v1015_v20, 4 }
 0x463   : > { %v1056_v28 = vadd.f32 %v1052_v50, %v1048_v24 }
 0x464   : > { %v1057_v31 = vadd.f32 %v1053_v26, %v1049_v19 }
 0x466   : > { %v1060_v32 = vcombine.low %v1056_v28, %v1057_v31 }
 0x468   : > { %1062 = vst [vmem:[%s340_s27] sm:$0xff] %v1060_v32 }
 0x469   : > { %1461 = shalt.err (!%p1458_p3)
}
 0x46a   : > { %s1462_s23 = scalar_lea.hbm %s1936_s16, 128  ;;  %s1466_s27 = scalar_lea.hbm %s1987_s9, 256 }
 0x46b   : > { %p1463_p4 = scmp.ne.s32.totalorder %s1936_s16, %s1462_s23  ;;  %p1467_p9 = scmp.lt.u32.totalorder %s1936_s16, %s1987_s9 }
 0x46c   : > { %p1468_p10 = scmp.lt.u32.totalorder %s1466_s27, %s1462_s23  ;;  %p1470_p12 = scmp.lt.u32.totalorder %s1462_s23, %s1936_s16 }
 0x46d   : > { %p1464_p7 = pnand %p1463_p4, %p1616_p5 }
 0x46e   : > { %p1469_p11 = por %p1468_p10, %p1467_p9 }
 0x46f   : > { %p1465_p8 = pneg %p1464_p7 }
 0x470   : > { %p1471_p13 = por %p1470_p12, %p1469_p11 }
 0x472   : > { %p1472_p0 = pnand %p1471_p13, %p1465_p8 }
 0x474   : > { %1475 = shalt.err (!%p1472_p0)
}
 0x475   : > { %1201 = dma.vmem_to_hbm [thread:$0]  (%p1616_p5), %s1938_s29, 128, %s1936_s16, %s1064_s17  }
 0x476 PF: > { %p1207_p1 = scmp.ge.s32.totalorder %s1510_s12, 2  ;;  %s1090_s26 = sand.u32 1, %s1498_s30  }
 0x477   : > { %s1091_s13 = scalar_lea.sflag [#allocation6], %s1090_s26 }
 0x478   : > { %p1204_p2 = pnand %p1207_p1, %p1620_p6 }
 0x47a   : > { %1493 = dma.done.wait (!%p1204_p2), %s1091_s13, 128  }
 0x47b   : > { %1495 = vsyncadd (!%p1204_p2), %s1091_s13, 4294967168  ;;  %p19_p3 = scmp.ge.s32.totalorder %s1603_s15, 4   ;;  %s1992_s30 = smov %s1502_s10 }
 0x47c   : > { %s1993_s10 = smov %s1506_s11  ;;  %s1994_s11 = smov %s1614_s18 }
 0x47d   : > { %s1995_s12 = smov %s1603_s15  ;;  %21 = sbr.rel (!%p19_p3) target bundleno = 3 (0x3), region = 95 }
 0x484   :  { %1096 = vsyncpa [#allocation6], 1 }
 0x485   :  { %1098 = vsyncpa [#allocation6 + $0x1], 1 }

</bundles_post_ra>
